<compile_context>
chip_gen: v7x
topology: tpu7x:2x2x1
jax: 0.10.0
libtpu: 0.0.40
codegen_flags: <defaults>
</compile_context>

<pallas_src>
import functools

import jax
import jax.numpy as jnp
from jax import lax
from jax.experimental import pallas as pl
from jax.experimental.pallas import tpu as pltpu


def _round_up(a, b):
    return -(-a // b) * b


# ---------------------------------------------------------------------------
# Path A: single grid pass; un-normalized y stays resident in the output VMEM
# buffer; exact two-pass (mean then centered variance) batch statistics.
# ---------------------------------------------------------------------------
def _convblock_resident_kernel(x_ref, w_ref, g_ref, b_ref, o_ref, sum_ref,
                               *, eps, m_valid, m_padded, tm):
    t = pl.program_id(0)
    nt = pl.num_programs(0)

    @pl.when(t == 0)
    def _init():
        sum_ref[...] = jnp.zeros_like(sum_ref)

    # Conv tile as one MXU matmul; f32 accumulation.  (Cout, tm) -> lane-dense.
    y = jnp.dot(w_ref[...], x_ref[...], preferred_element_type=jnp.float32)

    sum_ref[...] += jnp.sum(y, axis=1, keepdims=True)
    col0 = pl.multiple_of(t * tm, 128)
    o_ref[:, pl.ds(col0, tm)] = y          # stash un-normalized y (f32), resident in VMEM

    @pl.when(t == nt - 1)
    def _finalize():
        inv_m = 1.0 / m_valid
        mean = sum_ref[...] * inv_m                       # (Cout, 1)
        yv = o_ref[...]                                   # (Cout, M_pad): real y + zero pad cols
        d = yv - mean
        csq = jnp.sum(d * d, axis=1, keepdims=True)
        # zero-padded columns each contributed mean^2 to csq -> remove them
        csq = csq - (m_padded - m_valid) * (mean * mean)
        var = jnp.maximum(csq * inv_m, 0.0)               # biased (training-mode) variance
        scale = g_ref[...] * lax.rsqrt(var + eps)         # rsqrt -> EUP slot (cheap)
        shift = b_ref[...] - mean * scale
        o_ref[...] = jnp.maximum(yv * scale + shift, 0.0).astype(o_ref.dtype)


# ---------------------------------------------------------------------------
# Path B (fallback for very large M): two grid passes, matmul recomputed in
# pass 1, E[y^2] - E[y]^2 statistics accumulated in f32.
# ---------------------------------------------------------------------------
def _convblock_twopass_kernel(x_ref, w_ref, g_ref, b_ref, o_ref,
                              sum_ref, ssq_ref, scale_ref, shift_ref,
                              *, eps, m_valid):
    p = pl.program_id(0)          # 0 = stats pass, 1 = normalize/write pass
    t = pl.program_id(1)          # M-tile index (innermost -> DMA/compute overlap)
    nt = pl.num_programs(1)

    @pl.when(jnp.logical_and(p == 0, t == 0))
    def _init():
        sum_ref[...] = jnp.zeros_like(sum_ref)
        ssq_ref[...] = jnp.zeros_like(ssq_ref)

    y = jnp.dot(w_ref[...], x_ref[...], preferred_element_type=jnp.float32)  # (Cout, tm)

    @pl.when(p == 0)
    def _accumulate():
        sum_ref[...] += jnp.sum(y, axis=1, keepdims=True)
        ssq_ref[...] += jnp.sum(y * y, axis=1, keepdims=True)

    @pl.when(jnp.logical_and(p == 0, t == nt - 1))
    def _finalize_stats():
        inv_m = 1.0 / m_valid
        mean = sum_ref[...] * inv_m
        var = jnp.maximum(ssq_ref[...] * inv_m - mean * mean, 0.0)
        scale = g_ref[...] * lax.rsqrt(var + eps)
        scale_ref[...] = scale
        shift_ref[...] = b_ref[...] - mean * scale

    @pl.when(p == 1)
    def _normalize():
        # Lane-dense (Cout, tm) store: unmasked vst.
        o_ref[...] = jnp.maximum(y * scale_ref[...] + shift_ref[...], 0.0
                                 ).astype(o_ref.dtype)


def conv_block_2d(x, weight, bias, gamma, beta, *, stride, eps=1e-5,
                  block_m=8192, operand_dtype=jnp.bfloat16,
                  force_two_pass=False, vmem_budget_bytes=None):
    """Forward of ConvBlock2D. x: (N, Cin, H, W) NCHW. Returns (N, Cout, Hout, Wout) f32."""
    # Conv bias is exactly cancelled by the training-mode BN mean subtraction; drop it.
    del bias
    N, Cin, H, W = x.shape
    Cout, _, k, _ = weight.shape
    s = int(stride)

    # Cast before building the 9x-duplicated im2col tensor (halves glue HBM traffic
    # for bf16 operands).
    x = x.astype(operand_dtype)

    # --- conv2d_same_padding logic (exact replica of the PyTorch helper, dilation=1) ---
    padding = (H - 1) * s - H + (k - 1) + 1
    if padding % 2 != 0:
        x = jnp.pad(x, ((0, 0), (0, 0), (0, 0), (0, 1)))   # F.pad(input, [0, 1])
    pad = padding // 2
    xp = jnp.pad(x, ((0, 0), (0, 0), (pad, pad), (pad, pad)))
    Hp, Wp = xp.shape[2], xp.shape[3]
    Hout = (Hp - k) // s + 1
    Wout = (Wp - k) // s + 1

    # --- K-major (K, M) im2col: only major-axis permutes, minor (H, W) dims untouched ---
    patches = []
    for kh in range(k):
        for kw in range(k):
            patches.append(xp[:, :, kh:kh + s * Hout:s, kw:kw + s * Wout:s])
    xcol = jnp.stack(patches, axis=2)                  # (N, Cin, k*k, Hout, Wout)
    xcol = jnp.transpose(xcol, (1, 2, 0, 3, 4))        # (Cin, k*k, N, Hout, Wout)
    M = N * Hout * Wout
    K = Cin * k * k
    xcol = xcol.reshape(K, M)                          # K-order matches weight reshape below
    wcol = weight.reshape(Cout, K).astype(operand_dtype)   # (Cout, K): (cin, kh, kw) order

    # --- M tiling (pad M with zero columns; they contribute 0 to the BN sums) ---
    tm = min(_round_up(int(block_m), 128), _round_up(M, 128))
    n_tiles = -(-M // tm)
    M_pad = n_tiles * tm
    if M_pad != M:
        xcol = jnp.pad(xcol, ((0, 0), (0, M_pad - M)))

    g = gamma.astype(jnp.float32).reshape(Cout, 1)
    b = beta.astype(jnp.float32).reshape(Cout, 1)

    # --- VMEM budgeting / path selection (64 MiB physical on v7x vs 128 MiB v5e/v6e) ---
    if vmem_budget_bytes is None:
        vmem_budget_bytes = 40 << 20
        try:
            cap = int(pltpu.get_tpu_info().vmem_capacity_bytes)
            vmem_budget_bytes = min(vmem_budget_bytes, (cap * 3) // 5)
        except Exception:
            pass
    itemsize = jnp.dtype(operand_dtype).itemsize
    x_tiles_bytes = 2 * _round_up(K, 8) * tm * itemsize        # double-buffered activation tiles
    est_resident = x_tiles_bytes + _round_up(Cout, 8) * M_pad * 4 + (256 << 10)
    est_twopass = x_tiles_bytes + 2 * _round_up(Cout, 8) * tm * 4 + (256 << 10)
    use_resident = (not force_two_pass) and (est_resident * 5 // 4 <= vmem_budget_bytes)
    est = est_resident if use_resident else est_twopass
    vmem_limit = int(min(max(est + (8 << 20), 32 << 20), 48 << 20))

    if use_resident:
        kernel = functools.partial(_convblock_resident_kernel, eps=float(eps),
                                   m_valid=float(M), m_padded=float(M_pad), tm=tm)
        out = pl.pallas_call(
            kernel,
            grid=(n_tiles,),
            in_specs=[
                pl.BlockSpec((K, tm), lambda t: (0, t)),      # activation tiles (streamed)
                pl.BlockSpec((Cout, K), lambda t: (0, 0)),    # weights (resident)
                pl.BlockSpec((Cout, 1), lambda t: (0, 0)),    # gamma (resident)
                pl.BlockSpec((Cout, 1), lambda t: (0, 0)),    # beta  (resident)
            ],
            # Constant index map -> full (Cout, M_pad) output stays resident in VMEM and
            # is flushed to HBM once, after the in-place normalize at the last tile.
            out_specs=pl.BlockSpec((Cout, M_pad), lambda t: (0, 0)),
            out_shape=jax.ShapeDtypeStruct((Cout, M_pad), jnp.float32),
            scratch_shapes=[pltpu.VMEM((Cout, 1), jnp.float32)],   # per-channel sum
            compiler_params=pltpu.CompilerParams(
                dimension_semantics=("arbitrary",),
                vmem_limit_bytes=vmem_limit),
        )(xcol, wcol, g, b)
    else:
        kernel = functools.partial(_convblock_twopass_kernel, eps=float(eps),
                                   m_valid=float(M))
        out = pl.pallas_call(
            kernel,
            grid=(2, n_tiles),                                 # (pass, M-tile); tile innermost
            in_specs=[
                pl.BlockSpec((K, tm), lambda p, t: (0, t)),
                pl.BlockSpec((Cout, K), lambda p, t: (0, 0)),
                pl.BlockSpec((Cout, 1), lambda p, t: (0, 0)),
                pl.BlockSpec((Cout, 1), lambda p, t: (0, 0)),
            ],
            # pass 0: pinned to block (0,0) (never written -> no spurious HBM traffic);
            # pass 1: one lane-dense output block per tile with the final values.
            out_specs=pl.BlockSpec((Cout, tm), lambda p, t: (0, p * t)),
            out_shape=jax.ShapeDtypeStruct((Cout, M_pad), jnp.float32),
            scratch_shapes=[
                pltpu.VMEM((Cout, 1), jnp.float32),            # per-channel sum
                pltpu.VMEM((Cout, 1), jnp.float32),            # per-channel sum of squares
                pltpu.VMEM((Cout, 1), jnp.float32),            # fused BN scale
                pltpu.VMEM((Cout, 1), jnp.float32),            # fused BN shift
            ],
            compiler_params=pltpu.CompilerParams(
                dimension_semantics=("arbitrary", "arbitrary"),
                vmem_limit_bytes=vmem_limit),
        )(xcol, wcol, g, b)

    # (Cout, M) -> (N, Cout, Hout, Wout): major-axis permute only (cheap relayout).
    out = out[:, :M].reshape(Cout, N, Hout, Wout)
    return jnp.transpose(out, (1, 0, 2, 3))


def _reference(x, weight, bias, gamma, beta, *, stride, eps=1e-5):
    """Pure-JAX f32 reference replicating the PyTorch forward (training-mode BN)."""
    x = x.astype(jnp.float32)
    N, Cin, H, W = x.shape
    k = weight.shape[2]
    s = int(stride)
    padding = (H - 1) * s - H + (k - 1) + 1
    if padding % 2 != 0:
        x = jnp.pad(x, ((0, 0), (0, 0), (0, 0), (0, 1)))
    pad = padding // 2
    y = lax.conv_general_dilated(
        x, weight.astype(jnp.float32), window_strides=(s, s),
        padding=((pad, pad), (pad, pad)),
        dimension_numbers=("NCHW", "OIHW", "NCHW"))
    y = y + bias[None, :, None, None]
    mean = jnp.mean(y, axis=(0, 2, 3), keepdims=True)
    var = jnp.mean((y - mean) ** 2, axis=(0, 2, 3), keepdims=True)   # biased (training mode)
    y_hat = (y - mean) * lax.rsqrt(var + eps)
    out = y_hat * gamma[None, :, None, None] + beta[None, :, None, None]
    return jnp.maximum(out, 0.0)


if __name__ == "__main__":
    # ConvBlock2D(in_channels=4, out_channels=8, kernel_size=3, stride=1)
    N, Cin, H, W = 2, 4, 16, 16
    Cout, k, stride = 8, 3, 1

    key = jax.random.PRNGKey(0)
    kw_, kb_, kg_, kbe_, kx_ = jax.random.split(key, 5)
    weight = 0.1 * jax.random.normal(kw_, (Cout, Cin, k, k), jnp.float32)
    bias = 0.1 * jax.random.normal(kb_, (Cout,), jnp.float32)
    gamma = 1.0 + 0.1 * jax.random.normal(kg_, (Cout,), jnp.float32)
    beta = 0.1 * jax.random.normal(kbe_, (Cout,), jnp.float32)
    x = jax.random.normal(kx_, (N, Cin, H, W), jnp.float32)

    ref = _reference(x, weight, bias, gamma, beta, stride=stride)

    # 1) f32 MXU operands, resident-output single-pass path (exact two-pass variance).
    out_f32 = jax.block_until_ready(
        conv_block_2d(x, weight, bias, gamma, beta, stride=stride,
                      operand_dtype=jnp.float32))
    assert out_f32.shape == ref.shape, (out_f32.shape, ref.shape)
    assert jnp.allclose(out_f32, ref, rtol=5e-4, atol=5e-4), \
        float(jnp.max(jnp.abs(out_f32 - ref)))

    # 2) multi-tile resident path (block_m=128 -> 4 tiles, dynamic-offset VMEM stores).
    out_tiled = jax.block_until_ready(
        conv_block_2d(x, weight, bias, gamma, beta, stride=stride,
                      operand_dtype=jnp.float32, block_m=128))
    assert jnp.allclose(out_tiled, ref, rtol=5e-4, atol=5e-4), \
        float(jnp.max(jnp.abs(out_tiled - ref)))

    # 3) forced two-grid-pass fallback path (for very large M) must also match tightly.
    out_2p = jax.block_until_ready(
        conv_block_2d(x, weight, bias, gamma, beta, stride=stride,
                      operand_dtype=jnp.float32, block_m=128, force_two_pass=True))
    assert jnp.allclose(out_2p, ref, rtol=5e-4, atol=5e-4), \
        float(jnp.max(jnp.abs(out_2p - ref)))

    # 4) default bf16 MXU operands (halved HBM activation traffic); looser tolerance
    #    because batch stats are computed from bf16-rounded conv results.
    out_bf16 = jax.block_until_ready(
        conv_block_2d(x, weight, bias, gamma, beta, stride=stride))
    assert out_bf16.shape == ref.shape, (out_bf16.shape, ref.shape)
    assert jnp.allclose(out_bf16, ref, rtol=3e-2, atol=3e-2), \
        float(jnp.max(jnp.abs(out_bf16 - ref)))

    # 5) stride=2 exercises the odd-padding branch of conv2d_same_padding.
    ref_s2 = _reference(x, weight, bias, gamma, beta, stride=2)
    out_s2 = jax.block_until_ready(
        conv_block_2d(x, weight, bias, gamma, beta, stride=2,
                      operand_dtype=jnp.float32))
    assert out_s2.shape == ref_s2.shape, (out_s2.shape, ref_s2.shape)
    assert jnp.allclose(out_s2, ref_s2, rtol=5e-4, atol=5e-4), \
        float(jnp.max(jnp.abs(out_s2 - ref_s2)))

    print("KERNEL_OK")
</pallas_src>

<mosaic_0001>
module attributes {stable_mosaic.version = 11 : i64} {
  func.func @_convblock_resident_kernel(%arg0: i32, %arg1: memref<36x512xf32, #tpu.memory_space<vmem>>, %arg2: memref<8x36xf32, #tpu.memory_space<vmem>>, %arg3: memref<8x1xf32, #tpu.memory_space<vmem>>, %arg4: memref<8x1xf32, #tpu.memory_space<vmem>>, %arg5: memref<8x512xf32, #tpu.memory_space<vmem>>, %arg6: memref<8x1xf32, #tpu.memory_space<vmem>>) attributes {dimension_semantics = [#tpu.dimension_semantics<arbitrary>], iteration_bounds = array<i64: 1>, scalar_prefetch = 0 : i64, scratch_operands = 1 : i64, tpu.core_type = #tpu.core_type<tc>, window_params = [{transform_indices = @transform_0, window_bounds = array<i64: 36, 512>}, {pipeline_mode = #tpu.pipeline_mode<synchronous>, transform_indices = @transform_1, window_bounds = array<i64: 8, 36>}, {pipeline_mode = #tpu.pipeline_mode<synchronous>, transform_indices = @transform_2, window_bounds = array<i64: 8, 1>}, {pipeline_mode = #tpu.pipeline_mode<synchronous>, transform_indices = @transform_3, window_bounds = array<i64: 8, 1>}, {pipeline_mode = #tpu.pipeline_mode<synchronous>, transform_indices = @transform_4, window_bounds = array<i64: 8, 512>}]} {
    %c0_i32 = arith.constant 0 : i32
    %0 = arith.cmpi eq, %arg0, %c0_i32 : i32
    %1 = arith.extui %0 : i1 to i32
    %c0_i32_0 = arith.constant 0 : i32
    %2 = arith.cmpi ne, %1, %c0_i32_0 : i32
    scf.if %2 {
      %cst_12 = arith.constant 0.000000e+00 : f32
      %18 = vector.broadcast %cst_12 : f32 to vector<8x1xf32>
      %c0_13 = arith.constant 0 : index
      %c0_14 = arith.constant 0 : index
      %19 = vector.load %arg6[%c0_13, %c0_14] : memref<8x1xf32, #tpu.memory_space<vmem>>, vector<8x1xf32>
      tpu.vector_store %arg6[%c0_13, %c0_14], %18 {strides = array<i32>} : memref<8x1xf32, #tpu.memory_space<vmem>>, vector<8x1xf32>,
    } else {
    }
    %c0 = arith.constant 0 : index
    %c0_1 = arith.constant 0 : index
    %3 = vector.load %arg2[%c0, %c0_1] : memref<8x36xf32, #tpu.memory_space<vmem>>, vector<8x36xf32>
    %c0_2 = arith.constant 0 : index
    %c0_3 = arith.constant 0 : index
    %4 = vector.load %arg1[%c0_2, %c0_3] : memref<36x512xf32, #tpu.memory_space<vmem>>, vector<36x512xf32>
    %cst = arith.constant dense<0.000000e+00> : vector<8x512xf32>
    %5 = tpu.matmul %3, %4, %cst {dimension_numbers = #tpu.dot_dimension_numbers<[1], [0], [0], [1], [0, 0, 1, 1], [], []>} : vector<8x36xf32>, vector<36x512xf32>, vector<8x512xf32> -> vector<8x512xf32>
    %c0_4 = arith.constant 0 : index
    %c0_5 = arith.constant 0 : index
    %6 = vector.load %arg6[%c0_4, %c0_5] : memref<8x1xf32, #tpu.memory_space<vmem>>, vector<8x1xf32>
    %cst_6 = arith.constant dense<0.000000e+00> : vector<8xf32>
    %7 = vector.multi_reduction <add>, %5, %cst_6 [1] : vector<8x512xf32> to vector<8xf32>
    %8 = vector.shape_cast %7 : vector<8xf32> to vector<8x1xf32>
    %9 = arith.addf %6, %8 : vector<8x1xf32>
    %c0_7 = arith.constant 0 : index
    %c0_8 = arith.constant 0 : index
    %10 = vector.load %arg6[%c0_7, %c0_8] : memref<8x1xf32, #tpu.memory_space<vmem>>, vector<8x1xf32>
    tpu.vector_store %arg6[%c0_7, %c0_8], %9 {strides = array<i32>} : memref<8x1xf32, #tpu.memory_space<vmem>>, vector<8x1xf32>,
    %c512_i32 = arith.constant 512 : i32
    %11 = arith.muli %arg0, %c512_i32 : i32
    %12 = tpu.assume_multiple %11, 128 : i32
    %c0_9 = arith.constant 0 : index
    %13 = arith.index_cast %12 : i32 to index
    %14 = vector.load %arg5[%c0_9, %13] : memref<8x512xf32, #tpu.memory_space<vmem>>, vector<8x512xf32>
    tpu.vector_store %arg5[%c0_9, %13], %5 {strides = array<i32>} : memref<8x512xf32, #tpu.memory_space<vmem>>, vector<8x512xf32>,
    %c0_i32_10 = arith.constant 0 : i32
    %15 = arith.cmpi eq, %arg0, %c0_i32_10 : i32
    %16 = arith.extui %15 : i1 to i32
    %c0_i32_11 = arith.constant 0 : i32
    %17 = arith.cmpi ne, %16, %c0_i32_11 : i32
    scf.if %17 {
      %c0_12 = arith.constant 0 : index
      %c0_13 = arith.constant 0 : index
      %18 = vector.load %arg6[%c0_12, %c0_13] : memref<8x1xf32, #tpu.memory_space<vmem>>, vector<8x1xf32>
      %cst_14 = arith.constant 0.001953125 : f32
      %19 = vector.broadcast %cst_14 : f32 to vector<8x1xf32>
      %20 = arith.mulf %18, %19 : vector<8x1xf32>
      %c0_15 = arith.constant 0 : index
      %c0_16 = arith.constant 0 : index
      %21 = vector.load %arg5[%c0_15, %c0_16] : memref<8x512xf32, #tpu.memory_space<vmem>>, vector<8x512xf32>
      %22 = vector.broadcast %20 : vector<8x1xf32> to vector<8x512xf32>
      %23 = arith.subf %21, %22 : vector<8x512xf32>
      %24 = arith.mulf %23, %23 : vector<8x512xf32>
      %cst_17 = arith.constant dense<0.000000e+00> : vector<8xf32>
      %25 = vector.multi_reduction <add>, %24, %cst_17 [1] : vector<8x512xf32> to vector<8xf32>
      %26 = vector.shape_cast %25 : vector<8xf32> to vector<8x1xf32>
      %27 = arith.mulf %20, %20 : vector<8x1xf32>
      %cst_18 = arith.constant 0.000000e+00 : f32
      %28 = vector.broadcast %cst_18 : f32 to vector<8x1xf32>
      %29 = arith.mulf %28, %27 : vector<8x1xf32>
      %30 = arith.subf %26, %29 : vector<8x1xf32>
      %cst_19 = arith.constant 0.001953125 : f32
      %31 = vector.broadcast %cst_19 : f32 to vector<8x1xf32>
      %32 = arith.mulf %30, %31 : vector<8x1xf32>
      %cst_20 = arith.constant 0.000000e+00 : f32
      %33 = vector.broadcast %cst_20 : f32 to vector<8x1xf32>
      %34 = arith.maximumf %32, %33 : vector<8x1xf32>
      %c0_21 = arith.constant 0 : index
      %c0_22 = arith.constant 0 : index
      %35 = vector.load %arg3[%c0_21, %c0_22] : memref<8x1xf32, #tpu.memory_space<vmem>>, vector<8x1xf32>
      %cst_23 = arith.constant 9.99999974E-6 : f32
      %36 = vector.broadcast %cst_23 : f32 to vector<8x1xf32>
      %37 = arith.addf %34, %36 : vector<8x1xf32>
      %38 = math.rsqrt %37 : vector<8x1xf32>
      %39 = arith.mulf %35, %38 : vector<8x1xf32>
      %c0_24 = arith.constant 0 : index
      %c0_25 = arith.constant 0 : index
      %40 = vector.load %arg4[%c0_24, %c0_25] : memref<8x1xf32, #tpu.memory_space<vmem>>, vector<8x1xf32>
      %41 = arith.mulf %20, %39 : vector<8x1xf32>
      %42 = arith.subf %40, %41 : vector<8x1xf32>
      %43 = vector.broadcast %39 : vector<8x1xf32> to vector<8x512xf32>
      %44 = arith.mulf %21, %43 : vector<8x512xf32>
      %45 = vector.broadcast %42 : vector<8x1xf32> to vector<8x512xf32>
      %46 = arith.addf %44, %45 : vector<8x512xf32>
      %cst_26 = arith.constant 0.000000e+00 : f32
      %47 = vector.broadcast %cst_26 : f32 to vector<8x512xf32>
      %48 = arith.maximumf %46, %47 : vector<8x512xf32>
      %c0_27 = arith.constant 0 : index
      %c0_28 = arith.constant 0 : index
      %49 = vector.load %arg5[%c0_27, %c0_28] : memref<8x512xf32, #tpu.memory_space<vmem>>, vector<8x512xf32>
      tpu.vector_store %arg5[%c0_27, %c0_28], %48 {strides = array<i32>} : memref<8x512xf32, #tpu.memory_space<vmem>>, vector<8x512xf32>,
    } else {
    }
    return
  }
  func.func @transform_0(%arg0: i32) -> (i32, i32) {
    %c0_i32 = arith.constant 0 : i32
    %c0_i32_0 = arith.constant 0 : i32
    return %c0_i32, %arg0 : i32, i32
  }
  func.func @transform_1(%arg0: i32) -> (i32, i32) {
    %c0_i32 = arith.constant 0 : i32
    %c0_i32_0 = arith.constant 0 : i32
    %c0_i32_1 = arith.constant 0 : i32
    return %c0_i32, %c0_i32_0 : i32, i32
  }
  func.func @transform_2(%arg0: i32) -> (i32, i32) {
    %c0_i32 = arith.constant 0 : i32
    %c0_i32_0 = arith.constant 0 : i32
    %c0_i32_1 = arith.constant 0 : i32
    return %c0_i32, %c0_i32_0 : i32, i32
  }
  func.func @transform_3(%arg0: i32) -> (i32, i32) {
    %c0_i32 = arith.constant 0 : i32
    %c0_i32_0 = arith.constant 0 : i32
    %c0_i32_1 = arith.constant 0 : i32
    return %c0_i32, %c0_i32_0 : i32, i32
  }
  func.func @transform_4(%arg0: i32) -> (i32, i32) {
    %c0_i32 = arith.constant 0 : i32
    %c0_i32_0 = arith.constant 0 : i32
    %c0_i32_1 = arith.constant 0 : i32
    return %c0_i32, %c0_i32_0 : i32, i32
  }
}

</mosaic_0001>

<bundles_post_ra>
// kernel: tpu_custom_call.1
= control target key start
LH: loop header
LB: loop body
LE: loop exit
PB: predicated region body
PF: predicated region fallthrough
CT: control target
= control target key end

     0   :  { %9 = vsyncpa [#allocation4], 0  ;;  %s464_s0 = inlined_call_operand.hbm [shape: f32[36,512], index: 0, kind: input, shape index: {}]   ;;  %s465_s1 = inlined_call_operand.vmem [shape: f32[8,36], index: 1, kind: input, shape index: {}]   ;;  %s466_s2 = inlined_call_operand.vmem [shape: f32[8,1], index: 2, kind: input, shape index: {}]   ;;  %s467_s3 = inlined_call_operand.vmem [shape: f32[8,1], index: 3, kind: input, shape index: {}]   ;;  %s468_s4 = inlined_call_operand.hbm [shape: f32[8,512], index: 4, kind: output, shape index: {}]  }
   0x1   :  { %10 = vsyncpa [#allocation5], 0  ;;  %s398_s15 = smov [#allocation3]   ;;  %s350_s19 = scalar_lea.hbm %s464_s0, 2560 }
   0x2   :  { %s16_s16 = sshll.u32 %s398_s15, 4  ;;  %p351_p0 = scmp.ne.s32.totalorder %s464_s0, %s350_s19  ;;  %s17_s16 = int_to_ptr.vmem [resolvable:$true] %s16_s16 }
   0x3   :  { %p354_p1 = scmp.lt.u32.totalorder %s350_s19, %s464_s0 }
   0x5   :  { %p356_p2 = pnand %p354_p1, %p351_p0 }
   0x7   :  { %359 = shalt.err (!%p356_p2)
}
   0x8   :  { %s360_s24 = scalar_lea.vmem %s17_s16, 2560  ;;  %p365_p4 = scmp.lt.s32.totalorder %s17_s16, %s17_s16 }
   0x9   :  { %p361_p3 = scmp.ne.s32.totalorder %s17_s16, %s360_s24  ;;  %p366_p5 = scmp.lt.s32.totalorder %s360_s24, %s360_s24 }
   0xb   :  { %p367_p6 = por %p366_p5, %p365_p4 }
   0xd   :  { %p368_p7 = pnand %p367_p6, %p361_p3 }
   0xf   :  { %371 = shalt.err (!%p368_p7)
}
  0x10   :  { %s399_s25 = smov 512   ;;  %s400_s26 = smov 32  }
  0x11   :  { %22 = dma.hbm_to_vmem [thread:$0]  %s464_s0, 2560, %s17_s16, [#allocation4], %s399_s25, %s399_s25, %s400_s26  }
  0x12   :  { %394 = dma.done.wait [#allocation4], 2560  }
  0x13   :  { %395 = vsyncadd [#allocation4], 4294964736  ;;  %vm36_vm0 = vcmask 7168   ;;  %v401_v0 = vmov 0.0   ;;  %v40_v1 = vld [vmem:[#allocation3 + $0x8] sm:$0xff]  ;;  %v39_v3 = vld [vmem:[#allocation3] sm:$0xff] }
  0x14   :  { %37 = vst.msk [vmem:[#allocation2] sm:$0xff] %vm36_vm0, %v401_v0  ;;  %140 = vmatprep.mubr.f32.mxu0 %v401_v0  ;;  %211 = vmatprep.mubr.f32.mxu1 %v401_v0  ;;  %v44_v2 = vld [vmem:[#allocation3 + $0x28] sm:$0xff]  ;;  %v43_v5 = vld [vmem:[#allocation3 + $0x20] sm:$0xff]  ;;  %v42_v6 = vld [vmem:[#allocation3 + $0x18] sm:$0xff]  ;;  %vm63_vm1 = vcmask 1043456   ;;  %vm59_vm2 = vcmask 293888  }
  0x15   :  { %v324_v4 = vpack.c.bf16 %v44_v2, %v40_v1  ;;  %v46_v7 = vld [vmem:[#allocation3 + $0x38] sm:$0xff]  ;;  %v326_v8 = vpack.c.bf16 %v43_v5, %v39_v3  ;;  %v41_v10 = vld [vmem:[#allocation3 + $0x10] sm:$0xff]  ;;  %v48_v12 = vld [vmem:[#allocation3 + $0x48] sm:$0xff]  ;;  %v402_v37 = vmov 0   ;;  %s403_s7 = smov [#allocation6]  }
  0x16   :  { %v332_v9 = vpack.c.bf16 %v46_v7, %v42_v6  ;;  %v45_v11 = vld [vmem:[#allocation3 + $0x30] sm:$0xff]  ;;  %v52_v14 = vld [vmem:[#allocation3 + $0x68] sm:$0xff]  ;;  %v47_v15 = vld [vmem:[#allocation3 + $0x40] sm:$0xff]  ;;  %346 = vset.pattern.permute.xlu0 %v402_v37  ;;  %347 = vset.pattern.permute.xlu1 %v402_v37  ;;  %s307_s8 = sshll.u32 %s403_s7, 4  ;;  %s308_s8 = int_to_ptr.vmem [resolvable:$true] %s307_s8 }
  0x17   :  { %325 = vmatprep.subr.bf16.mxu0 %v324_v4  ;;  %v334_v13 = vpack.c.bf16 %v45_v11, %v41_v10  ;;  %v51_v16 = vld [vmem:[#allocation3 + $0x60] sm:$0xff]  ;;  %v328_v17 = vpack.c.bf16 %v52_v14, %v48_v12  ;;  %v50_v19 = vld [vmem:[#allocation3 + $0x58] sm:$0xff]  ;;  %v49_v21 = vld [vmem:[#allocation3 + $0x50] sm:$0xff]  ;;  %p377_p9 = scmp.lt.s32.totalorder %s308_s8, %s308_s8 }
  0x18   :  { %327 = vmatpush1.bf16.msra.mxu0 %v326_v8  ;;  %333 = vmatprep.subr.bf16.mxu1 %v332_v9  ;;  %v330_v18 = vpack.c.bf16 %v51_v16, %v47_v15  ;;  %v54_v20 = vld [vmem:[#allocation3 + $0x78] sm:$0xff]  ;;  %v53_v23 = vld [vmem:[#allocation3 + $0x70] sm:$0xff]  ;;  %v56_v25 = vld [vmem:[#allocation3 + $0x88] sm:$0xf] }
  0x19   :  { %335 = vmatpush1.bf16.msra.mxu1 %v334_v13  ;;  %v336_v22 = vpack.c.bf16 %v54_v20, %v50_v19  ;;  %329 = vmatprep.subr.bf16.mxu0 %v328_v17  ;;  %v338_v24 = vpack.c.bf16 %v53_v23, %v49_v21  ;;  %v58_v26 = vld [vmem:[#allocation3 + $0x98] sm:$0xf]  ;;  %v55_v27 = vld [vmem:[#allocation3 + $0x80] sm:$0xf]  ;;  %v57_v29 = vld [vmem:[#allocation3 + $0x90] sm:$0xf] }
  0x1a   :  { %v38_v28 = vld [vmem:[%s465_s1] sm:$0xff] }
  0x1b   :  { %337 = vmatprep.subr.bf16.mxu1 %v336_v22  ;;  %v218_v38 = vld [vmem:[#allocation2] sm:$0xff] }
  0x1c   :  { %331 = vmatpush1.bf16.msra.mxu0 %v330_v18  ;;  %v268_v62 = vld [vmem:[%s466_s2] sm:$0xff]  ;;  %s372_s2 = scalar_lea.vmem %s308_s8, 512 }
  0x1d   :  { %339 = vmatpush1.bf16.msra.mxu1 %v338_v24  ;;  %318 = vmatprep.subr.msk.mxu0 %vm63_vm1, %v56_v25  ;;  %v272_v1 = vld [vmem:[%s467_s3] sm:$0xff]  ;;  %p373_p8 = scmp.ne.s32.totalorder %s308_s8, %s372_s2  ;;  %p378_p10 = scmp.lt.s32.totalorder %s372_s2, %s372_s2 }
  0x1e   :  { %321 = vmatprep.subr.msk.mxu1 %vm63_vm1, %v58_v26 }
  0x1f   :  { %p379_p11 = por %p378_p10, %p377_p9 }
  0x20   :  { %319 = vmatpush1.msk.msra.mxu0 %vm63_vm1, %v55_v27 }
  0x21   :  { %320 = vmatmul.mubr.msk.f32.vlgmr.msra.gmra.mrb[0].mxu0 %vm59_vm2, %v38_v28  ;;  %322 = vmatpush1.msk.msra.mxu1 %vm63_vm1, %v57_v29  ;;  %p380_p12 = pnand %p379_p11, %p373_p8 }
  0x22   :  { %323 = vmatmul.mubr.msk.f32.vlgmr.msra.gmra.mrb[0].mxu1 %vm59_vm2, %v38_v28 }
  0xf4   :  { %v142_v30 = vpop.f32.mrb[0].mxu0 }
  0xf5   :  { %v144_v31 = vpop.f32.mrb[1].mxu0  ;;  %v213_v32 = vpop.f32.mrb[0].mxu1 }
  0xf6   :  { %v219_v33 = vadd.f32 %v144_v31, %v142_v30  ;;  %v215_v34 = vpop.f32.mrb[1].mxu1 }
  0xf8   :  { %v220_v35 = vadd.f32 %v219_v33, %v213_v32 }
  0xfa   :  { %v221_v36 = vadd.f32 %v220_v35, %v215_v34 }
  0xfc   :  { %222 = vadd.xlane.f32.xlu0 %v221_v36 }
 0x189   :  { %v223_v39 = vpop.xlane.xlu0 %222 }
 0x18a   :  { %v224_v40 = vadd.f32 %v223_v39, %v218_v38 }
 0x18c   :  { %226 = vst.msk [vmem:[#allocation2] sm:$0xff] %vm36_vm0, %v224_v40 }
 0x193   :  { %v239_v41 = vld [vmem:[#allocation2] sm:$0xff] }
 0x194   :  { %v240_v42 = vmul.f32 0.001953125, %v239_v41 }
 0x196   :  { %247 = vperm.xlu0 %346, %v240_v42   ;;  %v263_v55 = vmul.f32 %v240_v42, %v240_v42 }
 0x198   :  { %v264_v56 = vmul.f32 0.0, %v263_v55 }
 0x215   :  { %v248_v43 = vpop.permute.xlu0 %247 }
 0x216   :  { %v250_v44 = vsub.f32 %v142_v30, %v248_v43  ;;  %v251_v45 = vsub.f32 %v144_v31, %v248_v43  ;;  %v252_v46 = vsub.f32 %v213_v32, %v248_v43  ;;  %v253_v49 = vsub.f32 %v215_v34, %v248_v43 }
 0x218   :  { %v254_v47 = vmul.f32 %v250_v44, %v250_v44  ;;  %v255_v48 = vmul.f32 %v251_v45, %v251_v45  ;;  %v256_v50 = vmul.f32 %v252_v46, %v252_v46  ;;  %v257_v52 = vmul.f32 %v253_v49, %v253_v49 }
 0x21a   :  { %v258_v51 = vadd.f32 %v255_v48, %v254_v47 }
 0x21c   :  { %v259_v53 = vadd.f32 %v258_v51, %v256_v50 }
 0x21e   :  { %v260_v54 = vadd.f32 %v259_v53, %v257_v52 }
 0x220   :  { %261 = vadd.xlane.f32.xlu1 %v260_v54 }
 0x2ad   :  { %v262_v57 = vpop.xlane.xlu1 %261 }
 0x2ae   :  { %v265_v58 = vsub.f32 %v262_v57, %v264_v56 }
 0x2b0   :  { %v266_v59 = vmul.f32 0.001953125, %v265_v58 }
 0x2b2   :  { %v267_v60 = vmax.f32 %v266_v59, 0.0 }
 0x2b4   :  { %v269_v61 = vadd.f32 1e-05, %v267_v60 }
 0x2b6   :  { %348 = vrsqrt.f32 %v269_v61 }
 0x2c0   :  { %v349_v63 = vpop.eup %348 }
 0x2c1   :  { %v271_v0 = vmul.f32 %v349_v63, %v268_v62 }
 0x2c3   :  { %277 = vperm.xlu1 %347, %v271_v0   ;;  %v273_v2 = vmul.f32 %v271_v0, %v240_v42 }
 0x2c5   :  { %v274_v3 = vsub.f32 %v272_v1, %v273_v2 }
 0x2c7   :  { %286 = vperm.xlu1 %347, %v274_v3  }
 0x342   :  { %v278_v4 = vpop.permute.xlu1 %277 }
 0x343   :  { %v280_v5 = vmul.f32 %v278_v4, %v142_v30  ;;  %v281_v6 = vmul.f32 %v278_v4, %v144_v31  ;;  %v282_v7 = vmul.f32 %v278_v4, %v213_v32  ;;  %v283_v8 = vmul.f32 %v278_v4, %v215_v34 }
 0x346   :  { %v287_v9 = vpop.permute.xlu1 %286 }
 0x347   :  { %v289_v10 = vadd.f32 %v287_v9, %v280_v5  ;;  %v290_v11 = vadd.f32 %v287_v9, %v281_v6  ;;  %v291_v12 = vadd.f32 %v287_v9, %v282_v7  ;;  %v292_v13 = vadd.f32 %v287_v9, %v283_v8 }
 0x349   :  { %v293_v14 = vmax.f32 %v289_v10, 0.0  ;;  %v294_v15 = vmax.f32 %v290_v11, 0.0  ;;  %v295_v16 = vmax.f32 %v291_v12, 0.0  ;;  %v296_v17 = vmax.f32 %v292_v13, 0.0 }
 0x34b   :  { %297 = vst [vmem:[#allocation6] sm:$0xff] %v293_v14  ;;  %298 = vst [vmem:[#allocation6 + $0x8] sm:$0xff] %v294_v15 }
 0x34c   :  { %299 = vst [vmem:[#allocation6 + $0x10] sm:$0xff] %v295_v16  ;;  %300 = vst [vmem:[#allocation6 + $0x18] sm:$0xff] %v296_v17 }
 0x34d   :  { %383 = shalt.err (!%p380_p12)
}
 0x34e   :  { %s384_s10 = scalar_lea.hbm %s468_s4, 512 }
 0x34f   :  { %p385_p13 = scmp.ne.s32.totalorder %s468_s4, %s384_s10  ;;  %p388_p0 = scmp.lt.u32.totalorder %s384_s10, %s468_s4 }
 0x351   :  { %p390_p1 = pnand %p388_p0, %p385_p13 }
 0x353   :  { %393 = shalt.err (!%p390_p1)
}
 0x354   :  { %310 = dma.vmem_to_hbm [thread:$0]  %s308_s8, 512, %s468_s4, [#allocation5]  }
 0x355   :  { %396 = dma.done.wait [#allocation5], 512  }
 0x356   :  { %397 = vsyncadd [#allocation5], 4294966784 }
 0x357   :  { %314 = vsyncpa [#allocation4], 1 }
 0x358   :  { %315 = vsyncpa [#allocation5], 1 }

</bundles_post_ra>
